<compile_context>
chip_gen: v5e
topology: v5e:2x2
jax: 0.10.0
libtpu: 0.0.40
codegen_flags: <defaults>
</compile_context>

<pallas_src>
import jax
import jax.numpy as jnp
from jax.experimental import pallas as pl
from jax.experimental.pallas import tpu as pltpu


def pmodel_kernel(z_ref, w1_ref, b1_ref, w2_ref, b2_ref, mu_ref):
    # Cast the streamed z tile to bf16 in-kernel (mem-bound kernel: VPU cast
    # is free and avoids an extra HBM round-trip in the wrapper).
    z = z_ref[...].astype(w1_ref.dtype)
    # hidden = ReLU(z @ W1 + b1)   (bf16 operands, f32 accumulation)
    h = jnp.dot(z, w1_ref[...], preferred_element_type=jnp.float32)
    h = jnp.maximum(h + b1_ref[...], 0.0)
    # mu = hidden @ W2 + b2
    mu = jnp.dot(h.astype(w2_ref.dtype), w2_ref[...],
                 preferred_element_type=jnp.float32)
    mu_ref[...] = (mu + b2_ref[...]).astype(mu_ref.dtype)


def _round_up(n, m):
    return ((n + m - 1) // m) * m


def _cdiv(a, b):
    return -(-a // b)


def prepare_params(w1, b1, w2, b2, *, compute_dtype=jnp.bfloat16):
    """One-time param prep: cast weights to bf16, biases to (1, N) f32."""
    return (w1.astype(compute_dtype),
            jnp.asarray(b1, jnp.float32).reshape(1, -1),
            w2.astype(compute_dtype),
            jnp.asarray(b2, jnp.float32).reshape(1, -1))


def _choose_batch_tile(B, batch_tile, min_rows_for_split=256):
    """Pick a batch tile: multiple of 16 (bf16 sublanes), bounded padding,
    and >= 2 grid steps for large batches (dual TensorCore on v7x)."""
    if B % 8 == 0 and B < min_rows_for_split and B <= batch_tile:
        return B  # single tile, zero padding, zero slicing
    n_tiles = max(2, _cdiv(B, batch_tile))
    return _round_up(_cdiv(B, n_tiles), 16)


def pmodel_forward(z, params, *, batch_tile=1024):
    """mu = ReLU(z @ w1 + b1) @ w2 + b2, as one Pallas kernel.

    z:  (B, latent) float32
    params = (w1 (latent, hidden) bf16, b1 (1, hidden) f32,
              w2 (hidden, out)    bf16, b2 (1, out)    f32)  from prepare_params.
    """
    w1, b1, w2, b2 = params
    B, latent = z.shape
    hidden = w1.shape[1]
    out_dim = w2.shape[1]

    bt = _choose_batch_tile(B, batch_tile)
    grid = _cdiv(B, bt)
    Bp = grid * bt

    # Only pad the batch (rows), never the feature lanes; padded rows are
    # sliced off below (they'd hold ReLU(b1)@W2 + b2, never contaminating
    # valid rows since each output row depends only on its own input row).
    z_in = z if Bp == B else jnp.pad(z, ((0, Bp - B), (0, 0)))

    # Weights/biases: same block every grid step -> stay VMEM-resident.
    # TODO(synk): if hidden/out_dim grow large, add pipeline_mode=pl.Buffered(1)
    # to these invariant specs to halve their double-buffered VMEM footprint.
    resident = lambda shape: pl.BlockSpec(shape, lambda i: (0, 0))

    mu = pl.pallas_call(
        pmodel_kernel,
        out_shape=jax.ShapeDtypeStruct((Bp, out_dim), jnp.float32),
        grid=(grid,),
        in_specs=[
            pl.BlockSpec((bt, latent), lambda i: (i, 0)),  # z streams per tile
            resident((latent, hidden)),
            resident((1, hidden)),
            resident((hidden, out_dim)),
            resident((1, out_dim)),
        ],
        out_specs=pl.BlockSpec((bt, out_dim), lambda i: (i, 0)),
        compiler_params=pltpu.CompilerParams(
            dimension_semantics=("parallel",)),
    )(z_in, w1, b1, w2, b2)

    return mu if Bp == B else mu[:B]


def init_params(key, input_dim, hidden_dim, latent_dim):
    # Deterministic, PyTorch-Linear-like init (uniform +- 1/sqrt(fan_in)).
    # PModel.mu = Linear(latent, hidden) -> ReLU -> Linear(hidden, input_dim)
    ks = jax.random.split(key, 4)

    def lin(kw, kb, fan_in, fan_out):
        bound = 1.0 / jnp.sqrt(fan_in)
        w = jax.random.uniform(kw, (fan_in, fan_out), jnp.float32, -bound, bound)
        b = jax.random.uniform(kb, (1, fan_out), jnp.float32, -bound, bound)
        return w, b

    w1, b1 = lin(ks[0], ks[1], latent_dim, hidden_dim)
    w2, b2 = lin(ks[2], ks[3], hidden_dim, input_dim)
    return w1, b1, w2, b2


if __name__ == "__main__":
    key = jax.random.PRNGKey(0)
    k_z, k_p = jax.random.split(key)

    B, input_dim, hidden_dim, latent_dim = 8, 32, 64, 16
    z = jax.random.normal(k_z, (B, latent_dim), jnp.float32)
    w1, b1, w2, b2 = init_params(k_p, input_dim, hidden_dim, latent_dim)

    params = prepare_params(w1, b1, w2, b2)   # one-time cast, reused per call
    mu = jax.block_until_ready(pmodel_forward(z, params))
    assert mu.shape == (B, input_dim)

    # Reference in plain JAX with the same bf16 rounding of inputs/weights
    # (the kernel uses bf16 operands + f32 accumulation).
    bf = lambda a: a.astype(jnp.bfloat16).astype(jnp.float32)
    h_ref = jnp.maximum(bf(z) @ bf(w1) + b1, 0.0)
    mu_ref = bf(h_ref) @ bf(w2) + b2
    assert jnp.allclose(mu, mu_ref, atol=1e-3, rtol=1e-3), "mu mismatch"

    print("KERNEL_OK")
</pallas_src>

<mosaic_0001>
module attributes {stable_mosaic.version = 11 : i64} {
  func.func @pmodel_kernel(%arg0: i32, %arg1: memref<8x16xf32, #tpu.memory_space<vmem>>, %arg2: memref<16x64xbf16, #tpu.memory_space<vmem>>, %arg3: memref<1x64xf32, #tpu.memory_space<vmem>>, %arg4: memref<64x32xbf16, #tpu.memory_space<vmem>>, %arg5: memref<1x32xf32, #tpu.memory_space<vmem>>, %arg6: memref<8x32xf32, #tpu.memory_space<vmem>>) attributes {dimension_semantics = [#tpu.dimension_semantics<parallel>], iteration_bounds = array<i64: 1>, scalar_prefetch = 0 : i64, scratch_operands = 0 : i64, tpu.core_type = #tpu.core_type<tc>, window_params = [{transform_indices = @transform_0, window_bounds = array<i64: 8, 16>}, {pipeline_mode = #tpu.pipeline_mode<synchronous>, transform_indices = @transform_1, window_bounds = array<i64: 16, 64>}, {pipeline_mode = #tpu.pipeline_mode<synchronous>, transform_indices = @transform_2, window_bounds = array<i64: 1, 64>}, {pipeline_mode = #tpu.pipeline_mode<synchronous>, transform_indices = @transform_3, window_bounds = array<i64: 64, 32>}, {pipeline_mode = #tpu.pipeline_mode<synchronous>, transform_indices = @transform_4, window_bounds = array<i64: 1, 32>}, {transform_indices = @transform_5, window_bounds = array<i64: 8, 32>}]} {
    %c0 = arith.constant 0 : index
    %c0_0 = arith.constant 0 : index
    %0 = vector.load %arg1[%c0, %c0_0] : memref<8x16xf32, #tpu.memory_space<vmem>>, vector<8x16xf32>
    %1 = arith.truncf %0 : vector<8x16xf32> to vector<8x16xbf16>
    %c0_1 = arith.constant 0 : index
    %c0_2 = arith.constant 0 : index
    %2 = vector.load %arg2[%c0_1, %c0_2] : memref<16x64xbf16, #tpu.memory_space<vmem>>, vector<16x64xbf16>
    %cst = arith.constant dense<0.000000e+00> : vector<8x64xf32>
    %3 = tpu.matmul %1, %2, %cst {dimension_numbers = #tpu.dot_dimension_numbers<[1], [0], [0], [1], [0, 0, 1, 1], [], []>} : vector<8x16xbf16>, vector<16x64xbf16>, vector<8x64xf32> -> vector<8x64xf32>
    %c0_3 = arith.constant 0 : index
    %c0_4 = arith.constant 0 : index
    %4 = vector.load %arg3[%c0_3, %c0_4] : memref<1x64xf32, #tpu.memory_space<vmem>>, vector<1x64xf32>
    %5 = vector.broadcast %4 : vector<1x64xf32> to vector<8x64xf32>
    %6 = arith.addf %3, %5 : vector<8x64xf32>
    %cst_5 = arith.constant 0.000000e+00 : f32
    %7 = vector.broadcast %cst_5 : f32 to vector<8x64xf32>
    %8 = arith.maximumf %6, %7 : vector<8x64xf32>
    %9 = arith.truncf %8 : vector<8x64xf32> to vector<8x64xbf16>
    %c0_6 = arith.constant 0 : index
    %c0_7 = arith.constant 0 : index
    %10 = vector.load %arg4[%c0_6, %c0_7] : memref<64x32xbf16, #tpu.memory_space<vmem>>, vector<64x32xbf16>
    %cst_8 = arith.constant dense<0.000000e+00> : vector<8x32xf32>
    %11 = tpu.matmul %9, %10, %cst_8 {dimension_numbers = #tpu.dot_dimension_numbers<[1], [0], [0], [1], [0, 0, 1, 1], [], []>} : vector<8x64xbf16>, vector<64x32xbf16>, vector<8x32xf32> -> vector<8x32xf32>
    %c0_9 = arith.constant 0 : index
    %c0_10 = arith.constant 0 : index
    %12 = vector.load %arg5[%c0_9, %c0_10] : memref<1x32xf32, #tpu.memory_space<vmem>>, vector<1x32xf32>
    %13 = vector.broadcast %12 : vector<1x32xf32> to vector<8x32xf32>
    %14 = arith.addf %11, %13 : vector<8x32xf32>
    %c0_11 = arith.constant 0 : index
    %c0_12 = arith.constant 0 : index
    %15 = vector.load %arg6[%c0_11, %c0_12] : memref<8x32xf32, #tpu.memory_space<vmem>>, vector<8x32xf32>
    tpu.vector_store %arg6[%c0_11, %c0_12], %14 {strides = array<i32>} : memref<8x32xf32, #tpu.memory_space<vmem>>, vector<8x32xf32>,
    return
  }
  func.func @transform_0(%arg0: i32) -> (i32, i32) {
    %c0_i32 = arith.constant 0 : i32
    %c0_i32_0 = arith.constant 0 : i32
    return %arg0, %c0_i32 : i32, i32
  }
  func.func @transform_1(%arg0: i32) -> (i32, i32) {
    %c0_i32 = arith.constant 0 : i32
    %c0_i32_0 = arith.constant 0 : i32
    %c0_i32_1 = arith.constant 0 : i32
    return %c0_i32, %c0_i32_0 : i32, i32
  }
  func.func @transform_2(%arg0: i32) -> (i32, i32) {
    %c0_i32 = arith.constant 0 : i32
    %c0_i32_0 = arith.constant 0 : i32
    %c0_i32_1 = arith.constant 0 : i32
    return %c0_i32, %c0_i32_0 : i32, i32
  }
  func.func @transform_3(%arg0: i32) -> (i32, i32) {
    %c0_i32 = arith.constant 0 : i32
    %c0_i32_0 = arith.constant 0 : i32
    %c0_i32_1 = arith.constant 0 : i32
    return %c0_i32, %c0_i32_0 : i32, i32
  }
  func.func @transform_4(%arg0: i32) -> (i32, i32) {
    %c0_i32 = arith.constant 0 : i32
    %c0_i32_0 = arith.constant 0 : i32
    %c0_i32_1 = arith.constant 0 : i32
    return %c0_i32, %c0_i32_0 : i32, i32
  }
  func.func @transform_5(%arg0: i32) -> (i32, i32) {
    %c0_i32 = arith.constant 0 : i32
    %c0_i32_0 = arith.constant 0 : i32
    return %arg0, %c0_i32 : i32, i32
  }
}

</mosaic_0001>

<bundles_post_ra>
// kernel: tpu_custom_call.1
= control target key start
LH: loop header
LB: loop body
LE: loop exit
PB: predicated region body
PF: predicated region fallthrough
CT: control target
= control target key end

     0   :  { %vm36_vm0 = vcmask 130048   ;;  %s240_s0 = inlined_call_operand.vmem [shape: f32[8,16], index: 0, kind: input, shape index: {}]   ;;  %s241_s1 = inlined_call_operand.vmem [shape: bf16[16,64], index: 1, kind: input, shape index: {}]   ;;  %s242_s2 = inlined_call_operand.vmem [shape: f32[1,64], index: 2, kind: input, shape index: {}]   ;;  %s243_s3 = inlined_call_operand.vmem [shape: bf16[64,32], index: 3, kind: input, shape index: {}]   ;;  %s244_s4 = inlined_call_operand.vmem [shape: f32[1,32], index: 4, kind: input, shape index: {}]   ;;  %s245_s5 = inlined_call_operand.hbm [shape: f32[8,32], index: 5, kind: output, shape index: {}]  }
   0x1   :  { %v148_v0 = vld [vmem:[%s241_s1] sm:$0xff]  ;;  %v152_v2 = vld [vmem:[%s243_s3 + $0x18] sm:$0xff]  ;;  %v151_v4 = vld [vmem:[%s243_s3 + $0x10] sm:$0xff] }
   0x2   :  { %v22_v1 = vld [vmem:[%s240_s0] sm:$0xff]  ;;  %47 = vmatpush.bf16.msra.mxu0 %v148_v0  ;;  %99 = vmatpush.bf16.msra.mxu1 %v152_v2 }
   0x3   :  { %v23_v3 = vpack.c.bf16 %v22_v1, %v22_v1 }
   0x4   :  { %10 = vsyncpa [#allocation3], 0  ;;  %v150_v5 = vld [vmem:[%s243_s3 + $0x8] sm:$0xff]  ;;  %v149_v6 = vld [vmem:[%s243_s3] sm:$0xff]  ;;  %vm91_vm1 = vcmask 523264   ;;  %s182_s7 = smov [#allocation2]  }
   0x5   :  { %130 = vmatmul.msk.bf16.vlgmr.msra.gmra.mxu0 %vm36_vm0, %v23_v3  ;;  %v154_v7 = vld [vmem:[%s242_s2] ss:$0 sm:$0xff]  ;;  %s115_s8 = sshll.u32 %s182_s7, 4  ;;  %s117_s10 = sshll.u32 %s245_s5, 4  ;;  %vm108_vm2 = vcmask 261120   ;;  %s116_s8 = int_to_ptr.vmem [resolvable:$true] %s115_s8  ;;  %s118_s10 = int_to_ptr.hbm [resolvable:$true] %s117_s10 }
   0x6   :  { %100 = vmatpush.bf16.msra.mxu1 %v151_v4  ;;  %v155_v13 = vld [vmem:[%s244_s4] ss:$0 sm:$0xff] }
   0xa   :  { %101 = vmatpush.bf16.msra.mxu1 %v150_v5 }
   0xe   :  { %102 = vmatpush.bf16.msra.mxu1 %v149_v6 }
  0x82   :  { %v49_v8 = vpop.f32.mrf.mxu0 }
  0x83   :  { %v50_v9 = vadd.f32 %v154_v7, %v49_v8 }
  0x85   :  { %v53_v10 = vmax.f32 %v50_v9, 0.0 }
  0x87   :  { %v54_v11 = vpack.c.bf16 %v53_v10, %v53_v10 }
  0x89   :  { %147 = vmatmul.msk.bf16.vlgmr.msra.gmra.mxu1 %vm91_vm1, %v54_v11 }
  0x8a   :  { %v51_v12 = vpop.f32.mrf.mxu0 }
 0x106   :  { %v104_v14 = vpop.f32.mrf.mxu1 }
 0x107   :  { %v105_v15 = vadd.f32 %v155_v13, %v104_v14 }
 0x109   :  { %109 = vst.msk [vmem:[#allocation2] sm:$0xff] %vm108_vm2, %v105_v15 }
 0x10a   :  { %120 = dma.vmem_to_hbm [thread:$0]  %s116_s8, 128, %s118_s10, [#allocation3]  }
 0x10e   :  { %v106_v16 = vpop.f32.mrf.mxu1 }
 0x10f   :  { %180 = dma.done.wait [#allocation3], 128  }
 0x110   :  { %181 = vsyncadd [#allocation3], 4294967168 }
 0x111   :  { %125 = vsyncpa [#allocation3], 1 }

</bundles_post_ra>
